<compile_context>
chip_gen: v6e
topology: v6e:2x2x1
jax: 0.10.0
libtpu: 0.0.40
codegen_flags: <defaults>
</compile_context>

<pallas_src>
import jax
import jax.numpy as jnp
from jax.experimental import pallas as pl
from jax.experimental.pallas import tpu as pltpu

K = 16  # pooling kernel size == stride (matches the PyTorch module)

# Per-step input-slab budget and explicit scoped-VMEM limit.  Double-buffered
# input (2 x 12 MiB) + tiny output buffers + relayout scratch stays under the
# 32 MiB limit, which itself fits every generation's physical VMEM.
_VMEM_INPUT_BLOCK_BUDGET = 12 * 1024 * 1024
_VMEM_LIMIT_BYTES = 32 * 1024 * 1024


def _maxpool_kernel(x_ref, o_ref):
    # x_ref: (p_blk, h_blk, K, W) -- a slab of fused (N*C) planes; the
    #        H -> (Hout, K) split was done in the wrapper, so each pool
    #        window's K rows already sit on the sublane axis.
    # o_ref: (p_blk, h_blk * Wout) -- flat, lane-dense output slab.
    x = x_ref[...]
    p_blk, h_blk, _, w = x.shape
    wout = w // K

    # 1) Sublane (row) reduction first: shrinks the data 16x before any
    #    lane-axis work, with no reshape of the full-size slab.
    rowmax = jnp.max(x, axis=2)                                   # (p_blk, h_blk, W)

    # 2) Lane-group-of-16 reduction on the 16x-smaller tensor.
    #    (If a bundle dump ever shows this lane-split relayout hot, swap in
    #    4 log-step `jnp.maximum(r, pltpu.roll(r, -s, axis=-1))` passes.)
    out = jnp.max(rowmax.reshape(p_blk, h_blk, wout, K), axis=3)  # (p_blk, h_blk, Wout)

    # 3) One flat lane-dense store per step (no narrow Wout-wide tiles).
    o_ref[...] = out.reshape(p_blk, h_blk * wout)


def _has_multiple_tensorcores():
    """Best effort: does this chip have >1 TensorCore (v7x / megacore)?"""
    try:
        kind = jax.devices()[0].device_kind.lower()
    except Exception:
        return False
    if "lite" in kind:  # v5e ("v5 lite") / v6e ("v6 lite"): single TC
        return False
    return ("v7" in kind) or ("v5p" in kind) or ("v4" in kind)


def _pick_blocks(p_total, hout, rowgroup_bytes, multi_tc):
    """Choose (p_blk, h_blk): fused planes per step, K-row groups per step."""
    plane_bytes = hout * rowgroup_bytes
    if plane_bytes <= _VMEM_INPUT_BLOCK_BUDGET:
        # Whole (H, W) planes per step; pack as many planes as fit the budget.
        h_blk = hout
        p_blk = min(p_total, max(1, _VMEM_INPUT_BLOCK_BUDGET // plane_bytes))
        if 8 < p_blk < p_total:
            p_blk = (p_blk // 8) * 8  # keep the block sublane-friendly
    else:
        # H-blocking fallback: one plane per step, split its K-row groups
        # (pool windows never cross a row group -> no cross-step reduction).
        p_blk = 1
        h_blk = min(hout, max(1, _VMEM_INPUT_BLOCK_BUDGET // rowgroup_bytes))

    if multi_tc and p_blk == p_total and h_blk == hout:
        # Keep >= 2 grid steps only where a second TensorCore can use them.
        if p_total >= 2:
            p_blk = (p_total + 1) // 2
        elif hout >= 2:
            h_blk = (hout + 1) // 2
    return p_blk, h_blk


def maxpool2d_k16(x):
    """x: (N, C, H, W) with H % 16 == 0 and W % 16 == 0 (PyTorch NCHW layout)."""
    n, c, h, w = x.shape
    if h % K != 0 or w % K != 0:
        raise ValueError(
            f"maxpool2d_k16 requires H and W divisible by {K}, got {(h, w)}")
    hout, wout = h // K, w // K
    p_total = n * c
    itemsize = jnp.dtype(x.dtype).itemsize

    p_blk, h_blk = _pick_blocks(
        p_total, hout, K * w * itemsize, _has_multiple_tensorcores())
    num_p = pl.cdiv(p_total, p_blk)
    num_h = pl.cdiv(hout, h_blk)

    # Free metadata reshape of contiguous NCHW data: fuse N*C and hoist the
    # H -> (Hout, K) split so the kernel never reshapes the full slab.
    x4 = x.reshape(p_total, hout, K, w)

    in_bytes = p_total * h * w * itemsize
    out_bytes = p_total * hout * wout * itemsize
    cost = pl.CostEstimate(
        flops=int(n * c * h * w),  # ~one max-compare per input element
        transcendentals=0,
        bytes_accessed=int(in_bytes + out_bytes),
    )

    out_flat = pl.pallas_call(
        _maxpool_kernel,
        out_shape=jax.ShapeDtypeStruct((p_total, hout * wout), x.dtype),
        grid_spec=pltpu.PrefetchScalarGridSpec(
            num_scalar_prefetch=0,
            grid=(num_p, num_h),
            in_specs=[
                pl.BlockSpec((p_blk, h_blk, K, w), lambda i, j: (i, j, 0, 0)),
            ],
            out_specs=pl.BlockSpec((p_blk, h_blk * wout), lambda i, j: (i, j)),
        ),
        compiler_params=pltpu.CompilerParams(
            dimension_semantics=("parallel", "parallel"),
            vmem_limit_bytes=_VMEM_LIMIT_BYTES,
        ),
        cost_estimate=cost,
    )(x4)

    # Each plane's flat slab is (hout, wout) row-major -> free reshape back.
    return out_flat.reshape(n, c, hout, wout)


class SimpleCNN:
    """JAX/Pallas port of the PyTorch SimpleCNN (MaxPool2d(K, K) only)."""

    def __call__(self, x):
        return maxpool2d_k16(x)


def _reference_maxpool(x):
    n, c, h, w = x.shape
    return jnp.max(x.reshape(n, c, h // K, K, w // K, K), axis=(3, 5))


if __name__ == "__main__":
    key = jax.random.PRNGKey(0)
    # Small but pool-compatible shape: N=2, C=4, spatial=32 -> output 2x2.
    x = jax.random.normal(key, (2, 4, 32, 32), dtype=jnp.float32)

    model = SimpleCNN()
    out = jax.block_until_ready(model(x))

    ref = _reference_maxpool(x)
    assert out.shape == (2, 4, 2, 2), out.shape
    assert jnp.allclose(out, ref), "mismatch vs reference max pool"

    print("KERNEL_OK")
</pallas_src>

<mosaic_0001>
module attributes {stable_mosaic.version = 11 : i64} {
  func.func @_maxpool_kernel(%arg0: i32, %arg1: i32, %arg2: memref<8x2x16x32xf32, #tpu.memory_space<vmem>>, %arg3: memref<8x4xf32, #tpu.memory_space<vmem>>) attributes {dimension_semantics = [#tpu.dimension_semantics<parallel>, #tpu.dimension_semantics<parallel>], iteration_bounds = array<i64: 1, 1>, scalar_prefetch = 0 : i64, scratch_operands = 0 : i64, tpu.core_type = #tpu.core_type<tc>, window_params = [{transform_indices = @transform_0, window_bounds = array<i64: 8, 2, 16, 32>}, {transform_indices = @transform_1, window_bounds = array<i64: 8, 4>}]} {
    %c0 = arith.constant 0 : index
    %c0_0 = arith.constant 0 : index
    %c0_1 = arith.constant 0 : index
    %c0_2 = arith.constant 0 : index
    %0 = vector.load %arg2[%c0, %c0_0, %c0_1, %c0_2] : memref<8x2x16x32xf32, #tpu.memory_space<vmem>>, vector<8x2x16x32xf32>
    %cst = arith.constant dense<0xFF800000> : vector<8x2x32xf32>
    %1 = vector.multi_reduction <maximumf>, %0, %cst [2] : vector<8x2x16x32xf32> to vector<8x2x32xf32>
    %2 = vector.shape_cast %1 : vector<8x2x32xf32> to vector<8x2x2x16xf32>
    %cst_3 = arith.constant dense<0xFF800000> : vector<8x2x2xf32>
    %3 = vector.multi_reduction <maximumf>, %2, %cst_3 [3] : vector<8x2x2x16xf32> to vector<8x2x2xf32>
    %4 = vector.shape_cast %3 : vector<8x2x2xf32> to vector<8x4xf32>
    %c0_4 = arith.constant 0 : index
    %c0_5 = arith.constant 0 : index
    %5 = vector.load %arg3[%c0_4, %c0_5] : memref<8x4xf32, #tpu.memory_space<vmem>>, vector<8x4xf32>
    tpu.vector_store %arg3[%c0_4, %c0_5], %4 {strides = array<i32>} : memref<8x4xf32, #tpu.memory_space<vmem>>, vector<8x4xf32>,
    return
  }
  func.func @transform_0(%arg0: i32, %arg1: i32) -> (i32, i32, i32, i32) {
    %c0_i32 = arith.constant 0 : i32
    %c0_i32_0 = arith.constant 0 : i32
    %c0_i32_1 = arith.constant 0 : i32
    return %arg0, %arg1, %c0_i32, %c0_i32_0 : i32, i32, i32, i32
  }
  func.func @transform_1(%arg0: i32, %arg1: i32) -> (i32, i32) {
    %c0_i32 = arith.constant 0 : i32
    return %arg0, %arg1 : i32, i32
  }
}

</mosaic_0001>

<bundles_post_ra>
// kernel: tpu_custom_call.1
= control target key start
LH: loop header
LB: loop body
LE: loop exit
PB: predicated region body
PF: predicated region fallthrough
CT: control target
= control target key end

     0   :  { %6 = vsyncpa [#allocation3], 0  ;;  %s608_s6 = smov [#allocation2]   ;;  %s798_s0 = inlined_call_operand.hbm [shape: f32[8,2,16,32], index: 0, kind: input, shape index: {}]   ;;  %s799_s1 = inlined_call_operand.vmem [shape: f32[8,4], index: 1, kind: output, shape index: {}]  }
   0x1   :  { %s12_s7 = sshll.u32 %s608_s6, 4  ;;  %s13_s7 = int_to_ptr.vmem [resolvable:$true] %s12_s7 }
   0x2   :  { %s594_s8 = scalar_lea.vmem %s13_s7, 4096  ;;  %p599_p1 = scmp.lt.s32.totalorder %s13_s7, %s13_s7 }
   0x3   :  { %p595_p0 = scmp.ne.s32.totalorder %s13_s7, %s594_s8  ;;  %p600_p2 = scmp.lt.s32.totalorder %s594_s8, %s594_s8 }
   0x5   :  { %p601_p3 = por %p600_p2, %p599_p1 }
   0x7   :  { %p602_p4 = pnand %p601_p3, %p595_p0 }
   0x9   :  { %605 = shalt.err (!%p602_p4)
}
   0xa   :  { %s609_s9 = smov 128   ;;  %s610_s10 = smov 8  }
   0xb   :  { %18 = dma.hbm_to_vmem [thread:$0]  %s798_s0, 4096, %s13_s7, [#allocation3], %s609_s9, %s609_s9, %s610_s10  }
   0xc   :  { %606 = dma.done.wait [#allocation3], 4096  }
   0xd   :  { %607 = vsyncadd [#allocation3], 4294963200  ;;  %vm54_vm0 = vcmask 261120   ;;  %v32_v0 = vld [vmem:[#allocation2 + $0x50] sm:$0xff]  ;;  %v33_v1 = vld [vmem:[#allocation2 + $0x58] sm:$0xff]  ;;  %s611_s0 = smov 112  }
   0xe   :  { %v24_v2 = vld [vmem:[#allocation2 + $0x10] sm:$0xff]  ;;  %v100_v3 = vsel %vm54_vm0, %v32_v0, -inf  ;;  %v101_v4 = vsel %vm54_vm0, %v33_v1, -inf  ;;  %v25_v5 = vld [vmem:[#allocation2 + $0x18] sm:$0xff]  ;;  %vm248_vm1 = vcmask 1041409   ;;  %vm368_vm2 = vcmask 123904  }
   0xf   :  { %v64_v6 = vsel %vm54_vm0, %v24_v2, -inf  ;;  %v36_v7 = vld [vmem:[#allocation2 + $0x70] sm:$0xff]  ;;  %v37_v8 = vld [vmem:[#allocation2 + $0x78] sm:$0xff]  ;;  %v102_v9 = vmax.f32 %v100_v3, %v101_v4  ;;  %v65_v10 = vsel %vm54_vm0, %v25_v5, -inf  ;;  %s615_s13 = smov 2   ;;  %vm569_vm3 = vcmask 15360  }
  0x10   :  { %v118_v11 = vsel %vm54_vm0, %v36_v7, -inf  ;;  %v119_v12 = vsel %vm54_vm0, %v37_v8, -inf  ;;  %v28_v13 = vld [vmem:[#allocation2 + $0x30] sm:$0xff]  ;;  %v29_v14 = vld [vmem:[#allocation2 + $0x38] sm:$0xff]  ;;  %v66_v16 = vmax.f32 %v64_v6, %v65_v10  ;;  %v26_v10 = vld [vmem:[#allocation2 + $0x20] sm:$0xff]  ;;  %vm571_vm4 = vcmask 31744  }
  0x11   :  { %v44_v15 = vld [vmem:[#allocation2 + $0xb0] sm:$0xff]  ;;  %v120_v17 = vmax.f32 %v118_v11, %v119_v12  ;;  %v82_v18 = vsel %vm54_vm0, %v28_v13, -inf  ;;  %v83_v19 = vsel %vm54_vm0, %v29_v14, -inf  ;;  %v45_v20 = vld [vmem:[#allocation2 + $0xb8] sm:$0xff]  ;;  %v103_v23 = vrot.slane %v102_v9, 4  ;;  %v27_v14 = vld [vmem:[#allocation2 + $0x28] sm:$0xff] }
  0x12   :  { %v40_v21 = vld [vmem:[#allocation2 + $0x90] sm:$0xff]  ;;  %v41_v22 = vld [vmem:[#allocation2 + $0x98] sm:$0xff]  ;;  %v84_v24 = vmax.f32 %v82_v18, %v83_v19  ;;  %v154_v25 = vsel %vm54_vm0, %v44_v15, -inf  ;;  %v155_v26 = vsel %vm54_vm0, %v45_v20, -inf  ;;  %v67_v28 = vrot.slane %v66_v16, 4  ;;  %v22_v15 = vld [vmem:[#allocation2] sm:$0xff] }
  0x13   :  { %v52_v27 = vld [vmem:[#allocation2 + $0xf0] sm:$0xff]  ;;  %v121_v29 = vrot.slane %v120_v17, 4  ;;  %v156_v30 = vmax.f32 %v154_v25, %v155_v26  ;;  %v136_v31 = vsel %vm54_vm0, %v40_v21, -inf  ;;  %v53_v32 = vld [vmem:[#allocation2 + $0xf8] sm:$0xff]  ;;  %v104_v34 = vmax.f32 %v102_v9, %v103_v23  ;;  %v23_v18 = vld [vmem:[#allocation2 + $0x8] sm:$0xff] }
  0x14   :  { %v48_v33 = vld [vmem:[#allocation2 + $0xd0] sm:$0xff]  ;;  %v85_v35 = vrot.slane %v84_v24, 4  ;;  %v137_v36 = vsel %vm54_vm0, %v41_v22, -inf  ;;  %v190_v37 = vsel %vm54_vm0, %v52_v27, -inf  ;;  %v68_v38 = vmax.f32 %v66_v16, %v67_v28  ;;  %v49_v42 = vld [vmem:[#allocation2 + $0xd8] sm:$0xff]  ;;  %v34_v23 = vld [vmem:[#allocation2 + $0x60] sm:$0xff] }
  0x15   :  { %v122_v39 = vmax.f32 %v120_v17, %v121_v29  ;;  %v157_v40 = vrot.slane %v156_v30, 4  ;;  %v138_v41 = vmax.f32 %v136_v31, %v137_v36  ;;  %v105_v43 = vrot.slane %v104_v34, 2 }
  0x16   :  { %v86_v44 = vmax.f32 %v84_v24, %v85_v35  ;;  %v191_v45 = vsel %vm54_vm0, %v53_v32, -inf  ;;  %v172_v46 = vsel %vm54_vm0, %v48_v33, -inf  ;;  %v69_v47 = vrot.slane %v68_v38, 2  ;;  %v35_v24 = vld [vmem:[#allocation2 + $0x68] sm:$0xff]  ;;  %v30_v33 = vld [vmem:[#allocation2 + $0x40] sm:$0xff] }
  0x17   :  { %v123_v48 = vrot.slane %v122_v39, 2  ;;  %v158_v49 = vmax.f32 %v156_v30, %v157_v40  ;;  %v139_v50 = vrot.slane %v138_v41, 4  ;;  %v106_v51 = vmax.f32 %v104_v34, %v105_v43  ;;  %v31_v34 = vld [vmem:[#allocation2 + $0x48] sm:$0xff]  ;;  %v42_v35 = vld [vmem:[#allocation2 + $0xa0] sm:$0xff] }
  0x18   :  { %v87_v52 = vrot.slane %v86_v44, 2  ;;  %v192_v53 = vmax.f32 %v190_v37, %v191_v45  ;;  %v173_v54 = vsel %vm54_vm0, %v49_v42, -inf  ;;  %v70_v55 = vmax.f32 %v68_v38, %v69_v47  ;;  %v38_v45 = vld [vmem:[#allocation2 + $0x80] sm:$0xff] }
  0x19   :  { %v124_v56 = vmax.f32 %v122_v39, %v123_v48  ;;  %v159_v57 = vrot.slane %v158_v49, 2  ;;  %v140_v58 = vmax.f32 %v138_v41, %v139_v50  ;;  %v107_v59 = vrot.slane %v106_v51, 1 }
  0x1a   :  { %v88_v60 = vmax.f32 %v86_v44, %v87_v52  ;;  %v193_v61 = vrot.slane %v192_v53, 4  ;;  %v174_v62 = vmax.f32 %v172_v46, %v173_v54  ;;  %v71_v63 = vrot.slane %v70_v55, 1  ;;  %v43_v44 = vld [vmem:[#allocation2 + $0xa8] sm:$0xff] }
  0x1b   :  { %v125_v0 = vrot.slane %v124_v56, 1  ;;  %v160_v1 = vmax.f32 %v158_v49, %v159_v57  ;;  %v141_v2 = vrot.slane %v140_v58, 2  ;;  %v645_v3 = vmax.f32 %v106_v51, %v107_v59  ;;  %v39_v54 = vld [vmem:[#allocation2 + $0x88] sm:$0xff] }
  0x1c   :  { %v89_v4 = vrot.slane %v88_v60, 1  ;;  %v194_v5 = vmax.f32 %v192_v53, %v193_v61  ;;  %v175_v6 = vrot.slane %v174_v62, 4  ;;  %v647_v7 = vmax.f32 %v70_v55, %v71_v63  ;;  %v50_v55 = vld [vmem:[#allocation2 + $0xe0] sm:$0xff] }
  0x1d   :  { %v161_v8 = vrot.slane %v160_v1, 1  ;;  %v142_v9 = vmax.f32 %v140_v58, %v141_v2  ;;  %225 = vrot.lane.b32.xlu1 %v645_v3, %s611_s0  ;;  %v651_v11 = vmax.f32 %v124_v56, %v125_v0  ;;  %v256_v19 = vrot.slane %v645_v3, 7  ;;  %v51_v0 = vld [vmem:[#allocation2 + $0xe8] sm:$0xff] }
  0x1e   :  { %v195_v12 = vrot.slane %v194_v5, 2  ;;  %v176_v13 = vmax.f32 %v174_v62, %v175_v6  ;;  %217 = vrot.lane.b32.xlu0 %v647_v7, %s611_s0  ;;  %v655_v16 = vmax.f32 %v88_v60, %v89_v4  ;;  %v73_v22 = vsel %vm54_vm0, %v26_v10, -inf }
  0x1f   :  { %v143_v17 = vrot.slane %v142_v9, 1  ;;  %v247_v25 = vrot.slane %v647_v7, 7  ;;  %v660_v26 = vmax.f32 %v160_v1, %v161_v8  ;;  %v74_v27 = vsel %vm54_vm0, %v27_v14, -inf  ;;  %v46_v1 = vld [vmem:[#allocation2 + $0xc0] sm:$0xff] }
  0x20   :  { %v196_v20 = vmax.f32 %v194_v5, %v195_v12  ;;  %v177_v21 = vrot.slane %v176_v13, 2  ;;  %v55_v28 = vsel %vm54_vm0, %v22_v15, -inf  ;;  %v75_v31 = vmax.f32 %v73_v22, %v74_v27 }
  0x21   :  { %229 = vrot.lane.b32.xlu1 %v651_v11, %s611_s0  ;;  %v56_v32 = vsel %vm54_vm0, %v23_v18, -inf  ;;  %v669_v36 = vmax.f32 %v142_v9, %v143_v17  ;;  %v109_v38 = vsel %vm54_vm0, %v34_v23, -inf  ;;  %v110_v39 = vsel %vm54_vm0, %v35_v24, -inf }
  0x22   :  { %v197_v29 = vrot.slane %v196_v20, 1  ;;  %v178_v30 = vmax.f32 %v176_v13, %v177_v21  ;;  %221 = vrot.lane.b32.xlu0 %v655_v16, %s611_s0  ;;  %v57_v37 = vmax.f32 %v55_v28, %v56_v32  ;;  %v260_v40 = vrot.slane %v651_v11, 7  ;;  %v47_v13 = vld [vmem:[#allocation2 + $0xc8] sm:$0xff] }
  0x23   :  { %v76_v42 = vrot.slane %v75_v31, 4  ;;  %v111_v43 = vmax.f32 %v109_v38, %v110_v39  ;;  %v91_v47 = vsel %vm54_vm0, %v30_v33, -inf  ;;  %v92_v48 = vsel %vm54_vm0, %v31_v34, -inf }
  0x24   :  { %v179_v41 = vrot.slane %v178_v30, 1  ;;  %v58_v46 = vrot.slane %v57_v37, 4  ;;  %v145_v49 = vsel %vm54_vm0, %v42_v35, -inf  ;;  %v679_v50 = vmax.f32 %v196_v20, %v197_v29 }
  0x25   :  { %237 = vrot.lane.b32.xlu1 %v660_v26, %s611_s0  ;;  %v77_v52 = vmax.f32 %v75_v31, %v76_v42  ;;  %v112_v53 = vrot.slane %v111_v43, 4  ;;  %v93_v57 = vmax.f32 %v91_v47, %v92_v48  ;;  %v146_v58 = vsel %vm54_vm0, %v43_v44, -inf }
  0x26   :  { %v681_v51 = vmax.f32 %v178_v30, %v179_v41  ;;  %233 = vrot.lane.b32.xlu0 %v669_v36, %s611_s0  ;;  %v59_v56 = vmax.f32 %v57_v37, %v58_v46  ;;  %v127_v59 = vsel %vm54_vm0, %v38_v45, -inf  ;;  %v252_v60 = vrot.slane %v655_v16, 7 }
  0x27   :  { %v78_v61 = vrot.slane %v77_v52, 2  ;;  %v113_v62 = vmax.f32 %v111_v43, %v112_v53  ;;  %v147_v63 = vmax.f32 %v145_v49, %v146_v58  ;;  %v94_v4 = vrot.slane %v93_v57, 4 }
  0x28   :  { %v60_v2 = vrot.slane %v59_v56, 2  ;;  %v128_v5 = vsel %vm54_vm0, %v39_v54, -inf  ;;  %v181_v6 = vsel %vm54_vm0, %v50_v55, -inf  ;;  %v182_v16 = vsel %vm54_vm0, %v51_v0, -inf }
  0x29   :  { %245 = vrot.lane.b32.xlu1 %v679_v50, %s611_s0  ;;  %v79_v8 = vmax.f32 %v77_v52, %v78_v61  ;;  %v114_v9 = vrot.slane %v113_v62, 2  ;;  %v148_v10 = vrot.slane %v147_v63, 4  ;;  %v129_v12 = vmax.f32 %v127_v59, %v128_v5 }
  0x2a   :  { %241 = vrot.lane.b32.xlu0 %v681_v51, %s611_s0  ;;  %v61_v14 = vmax.f32 %v59_v56, %v60_v2  ;;  %v95_v15 = vmax.f32 %v93_v57, %v94_v4  ;;  %v163_v17 = vsel %vm54_vm0, %v46_v1, -inf  ;;  %v183_v27 = vmax.f32 %v181_v6, %v182_v16 }
  0x2b   :  { %v80_v18 = vrot.slane %v79_v8, 1  ;;  %v115_v20 = vmax.f32 %v113_v62, %v114_v9  ;;  %v149_v21 = vmax.f32 %v147_v63, %v148_v10  ;;  %v130_v22 = vrot.slane %v129_v12, 4 }
  0x2c   :  { %v62_v23 = vrot.slane %v61_v14, 1  ;;  %v96_v24 = vrot.slane %v95_v15, 2  ;;  %v164_v28 = vsel %vm54_vm0, %v47_v13, -inf  ;;  %v184_v35 = vrot.slane %v183_v27, 4 }
  0x2d   :  { %v81_v29 = vmax.f32 %v79_v8, %v80_v18  ;;  %v116_v30 = vrot.slane %v115_v20, 1  ;;  %v150_v31 = vrot.slane %v149_v21, 2  ;;  %v131_v32 = vmax.f32 %v129_v12, %v130_v22 }
  0x2e   :  { %v63_v33 = vmax.f32 %v61_v14, %v62_v23  ;;  %v97_v34 = vmax.f32 %v95_v15, %v96_v24  ;;  %v165_v37 = vmax.f32 %v163_v17, %v164_v28  ;;  %v185_v43 = vmax.f32 %v183_v27, %v184_v35 }
  0x2f   :  { %219 = vrot.lane.b32.xlu1 %v81_v29, %s611_s0  ;;  %v117_v38 = vmax.f32 %v115_v20, %v116_v30  ;;  %v151_v39 = vmax.f32 %v149_v21, %v150_v31  ;;  %v132_v41 = vrot.slane %v131_v32, 2  ;;  %v700_v45 = vsel %vm248_vm1, %v252_v60, %v81_v29 }
  0x30   :  { %215 = vrot.lane.b32.xlu0 %v63_v33, %s611_s0  ;;  %v98_v42 = vrot.slane %v97_v34, 1  ;;  %v166_v44 = vrot.slane %v165_v37, 4  ;;  %v249_v48 = vsel %vm248_vm1, %v247_v25, %v63_v33  ;;  %v268_v52 = vrot.slane %v660_v26, 7 }
  0x31   :  { %v152_v46 = vrot.slane %v151_v39, 1  ;;  %v133_v47 = vmax.f32 %v131_v32, %v132_v41  ;;  %v708_v49 = vsel %vm248_vm1, %v260_v40, %v117_v38  ;;  %v186_v54 = vrot.slane %v185_v43, 2 }
  0x32   :  { %v99_v53 = vmax.f32 %v97_v34, %v98_v42  ;;  %v167_v55 = vmax.f32 %v165_v37, %v166_v44  ;;  %v264_v56 = vrot.slane %v669_v36, 7  ;;  %v276_v26 = vrot.slane %v679_v50, 7 }
  0x33   :  { %227 = vrot.lane.b32.xlu1 %v117_v38, %s611_s0  ;;  %v153_v57 = vmax.f32 %v151_v39, %v152_v46  ;;  %v134_v58 = vrot.slane %v133_v47, 1  ;;  %v187_v7 = vmax.f32 %v185_v43, %v186_v54  ;;  %v272_v62 = vrot.slane %v681_v51, 7 }
  0x34   :  { %223 = vrot.lane.b32.xlu0 %v99_v53, %s611_s0  ;;  %v168_v25 = vrot.slane %v167_v55, 2  ;;  %v257_v11 = vsel %vm248_vm1, %v256_v19, %v99_v53  ;;  %v612_v8 = vmov 1934713408   ;;  %v286_v10 = vlaneseq }
  0x35   :  { %v135_v40 = vmax.f32 %v133_v47, %v134_v58  ;;  %v188_v59 = vrot.slane %v187_v7, 1  ;;  %v719_v61 = vsel %vm248_vm1, %v268_v52, %v153_v57  ;;  %v284_v9 = vunpack.c.l.s4 %v612_v8 }
  0x36   :  { %v169_v60 = vmax.f32 %v167_v55, %v168_v25  ;;  %v738_v15 = vshrl.u32 %v286_v10, 7  ;;  %v613_v47 = vmov 0.0  }
  0x37   :  { %235 = vrot.lane.b32.xlu1 %v153_v57, %s611_s0  ;;  %v723_v36 = vsel %vm248_vm1, %v264_v56, %v135_v40  ;;  %v189_v3 = vmax.f32 %v187_v7, %v188_v59  ;;  %v285_v14 = vunpack.c.0.s8 %v284_v9 }
  0x38   :  { %231 = vrot.lane.b32.xlu0 %v135_v40, %s611_s0  ;;  %v170_v63 = vrot.slane %v169_v60, 1 }
  0x39   :  { %v728_v0 = vsel %vm248_vm1, %v276_v26, %v189_v3  ;;  %v742_v22 = vsub.s32 %v285_v14, %v738_v15 }
  0x3a   :  { %v171_v19 = vmax.f32 %v169_v60, %v170_v63 }
  0x3b   :  { %243 = vrot.lane.b32.xlu1 %v189_v3, %s611_s0 }
  0x3c   :  { %239 = vrot.lane.b32.xlu0 %v171_v19, %s611_s0  ;;  %v733_v50 = vsel %vm248_vm1, %v272_v62, %v171_v19 }
  0x8f   :  { %v226_v1 = vpop.permute.xlu1 %225 }
  0x90   :  { %v218_v2 = vpop.permute.xlu0 %217  ;;  %v258_v29 = vrot.slane %v226_v1, 7 }
  0x91   :  { %v250_v17 = vrot.slane %v218_v2, 7 }
  0x93   :  { %v230_v4 = vpop.permute.xlu1 %229 }
  0x94   :  { %v222_v5 = vpop.permute.xlu0 %221  ;;  %v262_v27 = vrot.slane %v230_v4, 7 }
  0x95   :  { %v254_v16 = vrot.slane %v222_v5, 7 }
  0x97   :  { %v238_v51 = vpop.permute.xlu1 %237 }
  0x98   :  { %v234_v6 = vpop.permute.xlu0 %233 }
  0x99   :  { %v266_v41 = vrot.slane %v234_v6, 7 }
  0x9b   :  { %v735_v12 = vpop.permute.xlu1 %245 }
  0x9c   :  { %v242_v13 = vpop.permute.xlu0 %241  ;;  %v278_v63 = vrot.slane %v735_v12, 7 }
  0x9d   :  { %v274_v57 = vrot.slane %v242_v13, 7 }
  0xa1   :  { %v220_v18 = vpop.permute.xlu1 %219 }
  0xa2   :  { %v255_v20 = vsel %vm248_vm1, %v254_v16, %v220_v18  ;;  %v216_v21 = vpop.permute.xlu0 %215 }
  0xa3   :  { %v293_v23 = vcombine.low %v700_v45, %v255_v20  ;;  %v251_v24 = vsel %vm248_vm1, %v250_v17, %v216_v21  ;;  %v270_v45 = vrot.slane %v238_v51, 7 }
  0xa4   :  { %v282_v28 = vcombine.low %v249_v48, %v251_v24 }
  0xa5   :  { %v228_v30 = vpop.permute.xlu1 %227  ;;  %v300_v35 = vrot.slane %v293_v23, %v742_v22 }
  0xa6   :  { %v263_v31 = vsel %vm248_vm1, %v262_v27, %v228_v30  ;;  %v224_v32 = vpop.permute.xlu0 %223  ;;  %v289_v33 = vrot.slane %v282_v28, %v742_v22 }
  0xa7   :  { %v259_v34 = vsel %vm248_vm1, %v258_v29, %v224_v32  ;;  %v315_v37 = vcombine.low %v708_v49, %v263_v31  ;;  %v301_v48 = vcombine.high %v300_v35, %v613_v47  ;;  %v375_v49 = vsel %vm368_vm2, %v300_v35, -inf }
  0xa8   :  { %v304_v38 = vcombine.low %v257_v11, %v259_v34  ;;  %v369_v39 = vsel %vm368_vm2, %v289_v33, -inf  ;;  %v290_v5 = vcombine.high %v289_v33, %v613_v47  ;;  %v434_v33 = vand.u32 127, %v286_v10 }
  0xa9   :  { %370 = vmax.xlane.f32.xlu0 %v369_v39  ;;  %v236_v42 = vpop.permute.xlu1 %235  ;;  %v322_v54 = vrot.slane %v315_v37, %v742_v22  ;;  %v378_v58 = vsel %vm368_vm2, %v301_v48, -inf  ;;  %v614_v39 = vmov 1983009808  }
  0xaa   :  { %v232_v43 = vpop.permute.xlu0 %231  ;;  %v311_v44 = vrot.slane %v304_v38, %v742_v22  ;;  %v271_v55 = vsel %vm248_vm1, %v270_v45, %v236_v42  ;;  %v372_v13 = vsel %vm368_vm2, %v290_v5, -inf  ;;  %v437_v37 = vsub.s32 %v434_v33, %v738_v15 }
  0xab   :  { %v267_v46 = vsel %vm248_vm1, %v266_v41, %v232_v43  ;;  %v337_v7 = vcombine.low %v719_v61, %v271_v55  ;;  %v387_v25 = vsel %vm368_vm2, %v322_v54, -inf  ;;  %v323_v59 = vcombine.high %v322_v54, %v613_v47 }
  0xac   :  { %v326_v52 = vcombine.low %v723_v36, %v267_v46  ;;  %v381_v53 = vsel %vm368_vm2, %v311_v44, -inf  ;;  %v312_v40 = vcombine.high %v311_v44, %v613_v47  ;;  %v517_v41 = vunpack.c.l.s4 %v614_v39 }
  0xad   :  { %382 = vmax.xlane.f32.xlu1 %v381_v53  ;;  %376 = vmax.xlane.f32.xlu0 %v375_v49  ;;  %v344_v3 = vrot.slane %v337_v7, %v742_v22  ;;  %v244_v61 = vpop.permute.xlu1 %243  ;;  %v390_v1 = vsel %vm368_vm2, %v323_v59, -inf }
  0xae   :  { %v240_v56 = vpop.permute.xlu0 %239  ;;  %v333_v11 = vrot.slane %v326_v52, %v742_v22  ;;  %v384_v62 = vsel %vm368_vm2, %v312_v40, -inf  ;;  %v518_v54 = vunpack.c.0.s8 %v517_v41 }
  0xaf   :  { %v275_v26 = vsel %vm248_vm1, %v274_v57, %v240_v56  ;;  %v399_v19 = vsel %vm368_vm2, %v344_v3, -inf  ;;  %v345_v9 = vcombine.high %v344_v3, %v613_v47 }
  0xb0   :  { %v348_v60 = vcombine.low %v733_v50, %v275_v26  ;;  %v393_v36 = vsel %vm368_vm2, %v333_v11, -inf  ;;  %v334_v4 = vcombine.high %v333_v11, %v613_v47  ;;  %v279_v50 = vsel %vm248_vm1, %v278_v63, %v244_v61 }
  0xb1   :  { %388 = vmax.xlane.f32.xlu1 %v387_v25  ;;  %379 = vmax.xlane.f32.xlu0 %v378_v58  ;;  %v359_v51 = vcombine.low %v728_v0, %v279_v50  ;;  %v402_v12 = vsel %vm368_vm2, %v345_v9, -inf }
  0xb2   :  { %v355_v2 = vrot.slane %v348_v60, %v742_v22  ;;  %v396_v8 = vsel %vm368_vm2, %v334_v4, -inf }
  0xb3   :  { %v366_v16 = vrot.slane %v359_v51, %v742_v22 }
  0xb4   :  { %v405_v6 = vsel %vm368_vm2, %v355_v2, -inf  ;;  %v356_v14 = vcombine.high %v355_v2, %v613_v47 }
  0xb5   :  { %394 = vmax.xlane.f32.xlu1 %v393_v36  ;;  %385 = vmax.xlane.f32.xlu0 %v384_v62  ;;  %v411_v0 = vsel %vm368_vm2, %v366_v16, -inf  ;;  %v367_v18 = vcombine.high %v366_v16, %v613_v47  ;;  %v521_v36 = vsub.s32 %v518_v54, %v738_v15 }
  0xb6   :  { %v408_v17 = vsel %vm368_vm2, %v356_v14, -inf }
  0xb7   :  { %v414_v20 = vsel %vm368_vm2, %v367_v18, -inf }
  0xb9   :  { %400 = vmax.xlane.f32.xlu1 %v399_v19  ;;  %391 = vmax.xlane.f32.xlu0 %v390_v1 }
  0xbd   :  { %406 = vmax.xlane.f32.xlu1 %v405_v6  ;;  %397 = vmax.xlane.f32.xlu0 %v396_v8 }
  0xc1   :  { %403 = vmax.xlane.f32.xlu0 %v402_v12  ;;  %373 = vmax.xlane.f32.xlu1 %v372_v13 }
  0xc5   :  { %409 = vmax.xlane.f32.xlu0 %v408_v17  ;;  %412 = vmax.xlane.f32.xlu1 %v411_v0 }
  0xc9   :  { %415 = vmax.xlane.f32.xlu0 %v414_v20 }
 0x132   :  { %v371_v21 = vpop.xlane.xlu0 %370 }
 0x133   :  { %v438_v44 = vrot.slane %v371_v21, %v437_v37 }
 0x136   :  { %v383_v23 = vpop.xlane.xlu1 %382  ;;  %v377_v24 = vpop.xlane.xlu0 %376 }
 0x137   :  { %v454_v47 = vrot.slane %v383_v23, %v437_v37  ;;  %v446_v49 = vrot.slane %v377_v24, %v437_v37 }
 0x13a   :  { %v389_v27 = vpop.xlane.xlu1 %388  ;;  %v380_v28 = vpop.xlane.xlu0 %379 }
 0x13b   :  { %v462_v48 = vrot.slane %v389_v27, %v437_v37  ;;  %v450_v52 = vrot.slane %v380_v28, %v437_v37 }
 0x13d   :  { %v500_v40 = vsel %vm248_vm1, %v450_v52, %v446_v49 }
 0x13e   :  { %v395_v29 = vpop.xlane.xlu1 %394  ;;  %v386_v30 = vpop.xlane.xlu0 %385 }
 0x13f   :  { %v458_v38 = vrot.slane %v386_v30, %v437_v37  ;;  %v470_v26 = vrot.slane %v395_v29, %v437_v37 }
 0x141   :  { %v501_v10 = vsel %vm248_vm1, %v458_v38, %v454_v47 }
 0x142   :  { %v401_v31 = vpop.xlane.xlu1 %400  ;;  %v392_v32 = vpop.xlane.xlu0 %391 }
 0x143   :  { %v466_v45 = vrot.slane %v392_v32, %v437_v37  ;;  %v478_v61 = vrot.slane %v401_v31, %v437_v37 }
 0x145   :  { %v502_v56 = vsel %vm248_vm1, %v466_v45, %v462_v48 }
 0x146   :  { %v407_v34 = vpop.xlane.xlu1 %406  ;;  %v398_v35 = vpop.xlane.xlu0 %397  ;;  %v523_v62 = vcombine.low %v500_v40, %v502_v56 }
 0x147   :  { %v486_v57 = vrot.slane %v407_v34, %v437_v37  ;;  %v474_v58 = vrot.slane %v398_v35, %v437_v37 }
 0x148   :  { %v530_v51 = vrot.slane %v523_v62, %v521_v36 }
 0x149   :  { %v503_v63 = vsel %vm248_vm1, %v474_v58, %v470_v26 }
 0x14a   :  { %v404_v42 = vpop.xlane.xlu0 %403  ;;  %v374_v43 = vpop.xlane.xlu1 %373 }
 0x14b   :  { %v442_v46 = vrot.slane %v374_v43, %v437_v37  ;;  %v482_v59 = vrot.slane %v404_v42, %v437_v37 }
 0x14d   :  { %v499_v53 = vsel %vm248_vm1, %v442_v46, %v438_v44  ;;  %v504_v50 = vsel %vm248_vm1, %v482_v59, %v478_v61 }
 0x14e   :  { %v410_v55 = vpop.xlane.xlu0 %409  ;;  %v515_v25 = vcombine.low %v499_v53, %v501_v10  ;;  %v413_v11 = vpop.xlane.xlu1 %412 }
 0x14f   :  { %v490_v7 = vrot.slane %v410_v55, %v437_v37  ;;  %v494_v19 = vrot.slane %v413_v11, %v437_v37 }
 0x150   :  { %v522_v2 = vrot.slane %v515_v25, %v521_v36 }
 0x151   :  { %v505_v60 = vsel %vm248_vm1, %v490_v7, %v486_v57 }
 0x152   :  { %v416_v3 = vpop.xlane.xlu0 %415  ;;  %v531_v4 = vcombine.low %v503_v63, %v505_v60  ;;  %v547_v12 = vcombine.low %v522_v2, %v530_v51 }
 0x153   :  { %v498_v1 = vrot.slane %v416_v3, %v437_v37 }
 0x154   :  { %v538_v8 = vrot.slane %v531_v4, %v521_v36  ;;  %v554_v15 = vrot.slane %v547_v12, %v742_v22 }
 0x155   :  { %v506_v5 = vsel %vm248_vm1, %v498_v1, %v494_v19 }
 0x156   :  { %v539_v6 = vcombine.low %v504_v50, %v506_v5 }
 0x158   :  { %v546_v9 = vrot.slane %v539_v6, %v521_v36 }
 0x15a   :  { %v555_v13 = vcombine.low %v538_v8, %v546_v9 }
 0x15c   :  { %v562_v14 = vrot.slane %v555_v13, %v742_v22 }
 0x15e   :  { %v564_v16 = vcombine.high %v554_v15, %v562_v14  ;;  %v563_v17 = vcombine.low %v554_v15, %v562_v14 }
 0x160   :  { %566 = vrot.lane.b32.xlu1 %v564_v16, %s615_s13 }
 0x1d2   :  { %v567_v0 = vpop.permute.xlu1 %566 }
 0x1d3   :  { %v570_v18 = vsel %vm569_vm3, %v563_v17, %v567_v0 }
 0x1d4   :  { %572 = vst.msk [vmem:[%s799_s1] sm:$0xff] %vm571_vm4, %v570_v18 }
 0x1d5   :  { %577 = vsyncpa [#allocation3], 1 }

</bundles_post_ra>
